<compile_context>
chip_gen: v7x
topology: tpu7x:2x2x1
jax: 0.10.0
libtpu: 0.0.40
codegen_flags: <defaults>
</compile_context>

<pallas_src>
import math

import jax
import jax.numpy as jnp
from jax import lax
from jax.experimental import pallas as pl
from jax.experimental.pallas import tpu as pltpu

FPAD = 128          # feature lanes (real feature dims <= 100 are zero-padded to 128)
TILE = 256          # node tile (M/K of the A @ Y matmul); 256 fills the v6e/v7x MXU
VMEM = pltpu.MemorySpace.VMEM


# ---------------------------- Pallas kernels ----------------------------

def _xw_kernel(x_ref, dinv_ref, w_ref, y_ref):
    """Per-layer leading pass: Y = (D^-1/2_src * (X @ W)) in bf16 (computed once,
    consumed by every row tile of the aggregation kernel)."""
    xw = jnp.dot(x_ref[...], w_ref[...], preferred_element_type=jnp.float32)
    y_ref[...] = (dinv_ref[...] * xw).astype(jnp.bfloat16)


def gcn_xw(x_pad, dinv, w, *, tile=TILE):
    npad = x_pad.shape[0]
    nt = npad // tile
    return pl.pallas_call(
        _xw_kernel,
        out_shape=jax.ShapeDtypeStruct((npad, FPAD), jnp.bfloat16),
        grid=(nt,),
        in_specs=[
            pl.BlockSpec((tile, FPAD), lambda i: (i, 0)),   # X rows (bf16)
            pl.BlockSpec((tile, 1),    lambda i: (i, 0)),   # D^-1/2 (0 on padded rows)
            pl.BlockSpec((FPAD, FPAD), lambda i: (0, 0)),   # W (bf16)
        ],
        out_specs=pl.BlockSpec((tile, FPAD), lambda i: (i, 0)),
        compiler_params=pltpu.CompilerParams(dimension_semantics=("parallel",)),
    )(x_pad.astype(jnp.bfloat16), dinv, w.astype(jnp.bfloat16))


def _gcn_agg_kernel(adj_ref, y_ref, dinv_dst_ref, b_ref, p_ref, h_ref, s_ref):
    """One (row-tile, src-tile) step of  h = relu(D^-1/2 (A+I) D^-1/2 (X W) + b)
    with Y = D^-1/2_src (X W) precomputed, accumulating directly into the resident
    output block h_ref, plus the fused TopKPooling score s = tanh(h . p) emitted
    lane-dense as a [1, TILE] row on the final reduction step."""
    i = pl.program_id(0)   # target-node (row) tile   -> "parallel"
    k = pl.program_id(1)   # source-node tile         -> "arbitrary" (reduction)

    @pl.when(k == 0)
    def _():
        h_ref[...] = jnp.zeros_like(h_ref)

    # acc += A[i-tile, k-tile] @ Y[k-tile]   (int8 0/1 -> bf16 is an exact, cheap upcast)
    a = adj_ref[...].astype(jnp.bfloat16)
    h_ref[...] += jnp.dot(a, y_ref[...], preferred_element_type=jnp.float32)

    # Self-loop of A_hat = D^-1/2 (A + I) D^-1/2: add Y_i once when the source tile
    # covers the row tile; the trailing dinv_dst scaling makes it dinv_i^2 * XW_i.
    @pl.when(k == i)
    def _():
        h_ref[...] += y_ref[...].astype(jnp.float32)

    @pl.when(k == pl.num_programs(1) - 1)
    def _():
        dinv = dinv_dst_ref[...]
        valid = (dinv > 0.0).astype(jnp.float32)        # zero out padded rows (dinv==0)
        h = jnp.maximum(dinv * h_ref[...] + b_ref[...], 0.0) * valid
        h_ref[...] = h
        # lane-dense score row [1, TILE] = tanh(p @ h^T) via trans_b dot_general
        s_ref[...] = jnp.tanh(
            lax.dot_general(p_ref[...], h, (((1,), (1,)), ((), ())),
                            preferred_element_type=jnp.float32))


def gcn_aggregate(adj_pad, y, dinv, b, p_row, *, tile=TILE):
    """adj_pad: [Np, Np] int8 raw adjacency (0/1, no self loops), zero padded.
       y:       [Np, FPAD] bf16 = D^-1/2_src * (X @ W).
       dinv:    [Np, 1] f32, 1/sqrt(deg(A)+1), zero on padded rows.
       Returns h [Np, FPAD] f32 and the pooling score as a lane-dense [1, Np] f32 row."""
    npad = adj_pad.shape[0]
    nt = npad // tile
    return pl.pallas_call(
        _gcn_agg_kernel,
        out_shape=(jax.ShapeDtypeStruct((npad, FPAD), jnp.float32),
                   jax.ShapeDtypeStruct((1, npad), jnp.float32)),
        grid=(nt, nt),
        in_specs=[
            pl.BlockSpec((tile, tile), lambda i, k: (i, k)),   # adjacency tile (int8)
            pl.BlockSpec((tile, FPAD), lambda i, k: (k, 0)),   # Y, source rows (bf16)
            pl.BlockSpec((tile, 1),    lambda i, k: (i, 0)),   # D^-1/2 of target nodes
            pl.BlockSpec((1, FPAD),    lambda i, k: (0, 0)),   # bias
            pl.BlockSpec((1, FPAD),    lambda i, k: (0, 0)),   # pool vector (pre-normalized)
        ],
        out_specs=(pl.BlockSpec((tile, FPAD), lambda i, k: (i, 0)),   # resident accumulator
                   pl.BlockSpec((1, tile),    lambda i, k: (0, i))),
        compiler_params=pltpu.CompilerParams(
            dimension_semantics=("parallel", "arbitrary")),
    )(adj_pad, y, dinv, b, p_row)


def _head_kernel(xp_ref, w1_ref, b1_ref, w2_ref, b2_ref, mask_ref, o_ref):
    xp = xp_ref[...]                              # [B, n2, FPAD]
    gmax = jnp.max(xp, axis=1)                    # global_max_pool  [B, FPAD]
    gmean = jnp.mean(xp, axis=1)                  # global_mean_pool [B, FPAD]
    # fc1 as one dot: concat([gmp, gap]) lives on the contraction axis (256 wide).
    z = jnp.concatenate([gmax, gmean], axis=-1)   # [B, 2*FPAD]
    h = jnp.dot(z, w1_ref[...], preferred_element_type=jnp.float32) + b1_ref[...]
    h = jnp.maximum(h, 0.0)
    h = h * mask_ref[...]                         # dropout (mask precomputed outside)
    y = jnp.dot(h, w2_ref[...], preferred_element_type=jnp.float32) + b2_ref[...]
    o_ref[...] = 1.0 / (1.0 + jnp.exp(-y))        # sigmoid


def head(xp, w1, b1, w2, b2, mask):
    # TODO(synk): at production batch sizes, grid this over blocks of graphs (and feed xp
    # as bf16) instead of loading the whole [B, n2, FPAD] f32 tensor unblocked into VMEM.
    B = xp.shape[0]
    return pl.pallas_call(
        _head_kernel,
        out_shape=jax.ShapeDtypeStruct((B, 1), jnp.float32),
        in_specs=[pl.BlockSpec(memory_space=VMEM)] * 6,
        out_specs=pl.BlockSpec(memory_space=VMEM),
    )(xp, w1, b1, w2, b2, mask)


# ------------------------------ JAX glue ------------------------------

def _pad_to(n, tile=TILE):
    return max(tile, ((n + tile - 1) // tile) * tile)


def _gcn_layer(A_pad, x_pad, n, w, b, p_row):
    """A_pad int8 [Np,Np], x_pad f32 [Np,FPAD] (padded rows zero), n = #real nodes."""
    npad = A_pad.shape[0]
    deg = jnp.sum(A_pad, axis=1, dtype=jnp.int32).astype(jnp.float32) + 1.0   # + self loop
    valid = (jnp.arange(npad) < n).astype(jnp.float32)
    dinv = (valid / jnp.sqrt(deg)).reshape(npad, 1)       # 0 on padded rows
    y = gcn_xw(x_pad, dinv, w)                            # [Np, FPAD] bf16
    h, s = gcn_aggregate(A_pad, y, dinv, b, p_row)
    return h[:n], s[0, :n]


def _topk_pool(h, score, A, n_per_graph, num_graphs, ratio=0.8):
    # TODO(synk): per-graph dynamic top-k + filter_adj is data-dependent gather glue, kept
    # in plain JAX; at scale this should become a PrefetchScalarGridSpec / pl.Element row
    # gather so A[perm][:, perm] never materializes extra N x N intermediates in HBM.
    k = int(math.ceil(ratio * n_per_graph))
    s = score.reshape(num_graphs, n_per_graph)
    _, idx = jax.lax.top_k(s, k)                                        # [B, k], descending
    perm = (idx + (jnp.arange(num_graphs) * n_per_graph)[:, None]).reshape(-1)
    x_new = h[perm] * score[perm][:, None]                              # x[perm] * tanh(score)[perm]
    A_new = A[perm][:, perm]                                            # filter_adj equivalent (int8)
    return x_new, A_new, k


def init_params(key, hidden_dim1=30, hidden_dim2=50, fc_hiddim=100, in_channels=30):
    ks = jax.random.split(key, 10)

    def glorot(k, fan_in, fan_out):
        lim = math.sqrt(6.0 / (fan_in + fan_out))
        return jax.random.uniform(k, (fan_in, fan_out), jnp.float32, -lim, lim)

    def pad2(a, r, c):
        out = jnp.zeros((r, c), jnp.float32)
        return out.at[:a.shape[0], :a.shape[1]].set(a)

    W1 = glorot(ks[0], in_channels, hidden_dim1)
    b1 = jax.random.uniform(ks[1], (1, hidden_dim1), jnp.float32, -0.1, 0.1)
    W2 = glorot(ks[2], hidden_dim1, hidden_dim2)
    b2 = jax.random.uniform(ks[3], (1, hidden_dim2), jnp.float32, -0.1, 0.1)
    p1 = jax.random.normal(ks[4], (hidden_dim1,), jnp.float32)
    p2 = jax.random.normal(ks[5], (hidden_dim2,), jnp.float32)
    Wf1 = glorot(ks[6], 2 * hidden_dim2, fc_hiddim)
    bf1 = jax.random.uniform(ks[7], (1, fc_hiddim), jnp.float32, -0.1, 0.1)
    Wf2 = glorot(ks[8], fc_hiddim, 1)
    bf2 = jax.random.uniform(ks[9], (1, 1), jnp.float32, -0.1, 0.1)

    p1n = p1 / jnp.linalg.norm(p1)
    p2n = p2 / jnp.linalg.norm(p2)

    # fc1 weight stacked so that concat([gmp, gap]) lies on the contraction axis:
    #   rows [0, FPAD)       -> gmp half (real rows 0..hidden_dim2-1)
    #   rows [FPAD, 2*FPAD)  -> gap half
    fc1_w = jnp.zeros((2 * FPAD, FPAD), jnp.float32)
    fc1_w = fc1_w.at[:hidden_dim2, :fc_hiddim].set(Wf1[:hidden_dim2])
    fc1_w = fc1_w.at[FPAD:FPAD + hidden_dim2, :fc_hiddim].set(Wf1[hidden_dim2:])

    # NOTE: fc_molfeature (Linear(14, 20)) exists in __init__ but is unused in forward -> omitted.
    return dict(
        conv1_w=pad2(W1, FPAD, FPAD), conv1_b=pad2(b1, 1, FPAD),
        conv2_w=pad2(W2, FPAD, FPAD), conv2_b=pad2(b2, 1, FPAD),
        pool1_p=pad2(p1n[None, :], 1, FPAD),
        pool2_p=pad2(p2n[None, :], 1, FPAD),
        fc1_w=fc1_w, fc1_b=pad2(bf1, 1, FPAD),
        fc2_w=pad2(Wf2, FPAD, 1), fc2_b=bf2,
    )


def my_gnn_forward(x, edge_index, batch, params, *, num_graphs, n_per_graph,
                   dropout_key=None, training=True):
    del batch  # equal-sized graphs: membership is implied by node ordering
    N = x.shape[0]
    Np = _pad_to(N)
    # dense adjacency built directly at padded size in int8 (row = target, col = source),
    # no self loops, no N x N f32 intermediate in HBM.
    A_pad = jnp.zeros((Np, Np), jnp.int8).at[edge_index[1], edge_index[0]].set(1)
    x_pad = jnp.zeros((Np, FPAD), jnp.float32).at[:N, :x.shape[1]].set(x)

    # conv1 + relu (+ fused pool1 score), then TopKPooling (ratio 0.8)
    h, s1 = _gcn_layer(A_pad, x_pad, N, params["conv1_w"], params["conv1_b"], params["pool1_p"])
    h, A1, n1 = _topk_pool(h, s1, A_pad[:N, :N], n_per_graph, num_graphs)

    # conv2 + relu (+ fused pool2 score), then TopKPooling
    N1 = h.shape[0]
    Np1 = _pad_to(N1)
    A1_pad = jnp.zeros((Np1, Np1), jnp.int8).at[:N1, :N1].set(A1)
    h_pad = jnp.zeros((Np1, FPAD), jnp.float32).at[:N1].set(h)
    h, s2 = _gcn_layer(A1_pad, h_pad, N1, params["conv2_w"], params["conv2_b"], params["pool2_p"])
    h, _, n2 = _topk_pool(h, s2, A1, n1, num_graphs)

    # readout (gmp || gap) + fc1 + relu + dropout + fc2 + sigmoid, fused in one kernel
    xp = h.reshape(num_graphs, n2, FPAD)
    if training:
        key = jax.random.PRNGKey(0) if dropout_key is None else dropout_key
        keep = jax.random.bernoulli(key, 0.6, (num_graphs, FPAD))
        mask = keep.astype(jnp.float32) / 0.6          # dropout p=0.4, inverted scaling
    else:
        mask = jnp.ones((num_graphs, FPAD), jnp.float32)
    return head(xp, params["fc1_w"], params["fc1_b"], params["fc2_w"], params["fc2_b"], mask)


if __name__ == "__main__":
    key = jax.random.PRNGKey(0)
    kx, kp, kd = jax.random.split(key, 3)

    B, n, F_in = 2, 8, 30            # 2 graphs x 8 nodes, 30 input node features
    N = B * n
    x = jax.random.normal(kx, (N, F_in), jnp.float32)

    # undirected ring inside each graph (both directions listed, PyG style)
    edges = []
    for b in range(B):
        off = b * n
        for i in range(n):
            edges.append((off + i, off + (i + 1) % n))
            edges.append((off + (i + 1) % n, off + i))
    edge_index = jnp.array(edges, dtype=jnp.int32).T     # [2, 32]
    batch = jnp.repeat(jnp.arange(B, dtype=jnp.int32), n)

    params = init_params(kp)
    out = my_gnn_forward(x, edge_index, batch, params,
                         num_graphs=B, n_per_graph=n, dropout_key=kd)
    jax.block_until_ready(out)
    assert out.shape == (B, 1)
    assert bool(jnp.all((out >= 0.0) & (out <= 1.0)))
    print("KERNEL_OK")
</pallas_src>

<mosaic_0001>
module attributes {stable_mosaic.version = 11 : i64} {
  func.func @_xw_kernel(%arg0: i32, %arg1: memref<256x128xbf16, #tpu.memory_space<vmem>>, %arg2: memref<256x1xf32, #tpu.memory_space<vmem>>, %arg3: memref<128x128xbf16, #tpu.memory_space<vmem>>, %arg4: memref<256x128xbf16, #tpu.memory_space<vmem>>) attributes {dimension_semantics = [#tpu.dimension_semantics<parallel>], iteration_bounds = array<i64: 1>, scalar_prefetch = 0 : i64, scratch_operands = 0 : i64, tpu.core_type = #tpu.core_type<tc>, window_params = [{transform_indices = @transform_0, window_bounds = array<i64: 256, 128>}, {transform_indices = @transform_1, window_bounds = array<i64: 256, 1>}, {pipeline_mode = #tpu.pipeline_mode<synchronous>, transform_indices = @transform_2, window_bounds = array<i64: 128, 128>}, {transform_indices = @transform_3, window_bounds = array<i64: 256, 128>}]} {
    %c0 = arith.constant 0 : index
    %c0_0 = arith.constant 0 : index
    %0 = vector.load %arg1[%c0, %c0_0] : memref<256x128xbf16, #tpu.memory_space<vmem>>, vector<256x128xbf16>
    %c0_1 = arith.constant 0 : index
    %c0_2 = arith.constant 0 : index
    %1 = vector.load %arg3[%c0_1, %c0_2] : memref<128x128xbf16, #tpu.memory_space<vmem>>, vector<128x128xbf16>
    %cst = arith.constant dense<0.000000e+00> : vector<256x128xf32>
    %2 = tpu.matmul %0, %1, %cst {dimension_numbers = #tpu.dot_dimension_numbers<[1], [0], [0], [1], [0, 0, 1, 1], [], []>} : vector<256x128xbf16>, vector<128x128xbf16>, vector<256x128xf32> -> vector<256x128xf32>
    %c0_3 = arith.constant 0 : index
    %c0_4 = arith.constant 0 : index
    %3 = vector.load %arg2[%c0_3, %c0_4] : memref<256x1xf32, #tpu.memory_space<vmem>>, vector<256x1xf32>
    %4 = vector.broadcast %3 : vector<256x1xf32> to vector<256x128xf32>
    %5 = arith.mulf %4, %2 : vector<256x128xf32>
    %6 = arith.truncf %5 : vector<256x128xf32> to vector<256x128xbf16>
    %c0_5 = arith.constant 0 : index
    %c0_6 = arith.constant 0 : index
    %7 = vector.load %arg4[%c0_5, %c0_6] : memref<256x128xbf16, #tpu.memory_space<vmem>>, vector<256x128xbf16>
    tpu.vector_store %arg4[%c0_5, %c0_6], %6 {strides = array<i32>} : memref<256x128xbf16, #tpu.memory_space<vmem>>, vector<256x128xbf16>,
    return
  }
  func.func @transform_0(%arg0: i32) -> (i32, i32) {
    %c0_i32 = arith.constant 0 : i32
    %c0_i32_0 = arith.constant 0 : i32
    return %arg0, %c0_i32 : i32, i32
  }
  func.func @transform_1(%arg0: i32) -> (i32, i32) {
    %c0_i32 = arith.constant 0 : i32
    %c0_i32_0 = arith.constant 0 : i32
    return %arg0, %c0_i32 : i32, i32
  }
  func.func @transform_2(%arg0: i32) -> (i32, i32) {
    %c0_i32 = arith.constant 0 : i32
    %c0_i32_0 = arith.constant 0 : i32
    %c0_i32_1 = arith.constant 0 : i32
    return %c0_i32, %c0_i32_0 : i32, i32
  }
  func.func @transform_3(%arg0: i32) -> (i32, i32) {
    %c0_i32 = arith.constant 0 : i32
    %c0_i32_0 = arith.constant 0 : i32
    return %arg0, %c0_i32 : i32, i32
  }
}

</mosaic_0001>

<bundles_post_ra>
// kernel: tpu_custom_call.1
= control target key start
LH: loop header
LB: loop body
LE: loop exit
PB: predicated region body
PF: predicated region fallthrough
CT: control target
= control target key end

     0   :  { %v1094_v2 = vmov 0   ;;  %s1328_s0 = inlined_call_operand.vmem [shape: bf16[256,128], index: 0, kind: input, shape index: {}]   ;;  %s1329_s1 = inlined_call_operand.vmem [shape: f32[256,1], index: 1, kind: input, shape index: {}]   ;;  %s1330_s2 = inlined_call_operand.vmem [shape: bf16[128,128], index: 2, kind: input, shape index: {}]   ;;  %s1331_s3 = inlined_call_operand.hbm [shape: bf16[256,128], index: 3, kind: output, shape index: {}]  }
   0x1   :  { %v1046_v0 = vld [vmem:[%s1330_s2] sm:$0xff]   ;;  %v1047_v1 = vld [vmem:[%s1330_s2 + $0x8] sm:$0xff]   ;;  %1045 = vset.pattern.permute.xlu1 %v1094_v2  ;;  %1044 = vset.pattern.permute.xlu0 %v1094_v2  ;;  %v1048_v3 = vld [vmem:[%s1330_s2 + $0x10] sm:$0xff]  }
   0x2   :  { %976 = vmatprep.subr.bf16.mxu0 %v1046_v0  ;;  %1024 = vmatprep.subr.bf16.mxu1 %v1046_v0  ;;  %v371_v4 = vld [vmem:[%s1329_s1 + $0x10] sm:$0xff]  ;;  %v369_v5 = vld [vmem:[%s1329_s1] sm:$0xff]  ;;  %v1049_v6 = vld [vmem:[%s1330_s2 + $0x18] sm:$0xff]  }
   0x3   :  { %977 = vmatpush3.bf16.msra.mxu0 %v1046_v0  ;;  %1032 = vmatpush3.bf16.msra.mxu1 %v1046_v0  ;;  %v372_v7 = vld [vmem:[%s1329_s1 + $0x18] sm:$0xff]  ;;  %v370_v8 = vld [vmem:[%s1329_s1 + $0x8] sm:$0xff]  ;;  %v1054_v9 = vld [vmem:[%s1328_s0] sm:$0xff]  }
   0x4   :  { %978 = vmatprep.subr.bf16.mxu0 %v1047_v1  ;;  %1025 = vmatprep.subr.bf16.mxu1 %v1047_v1  ;;  %v1055_v10 = vld [vmem:[%s1328_s0 + $0x40] sm:$0xff]   ;;  %v374_v12 = vld [vmem:[%s1329_s1 + $0x28] sm:$0xff]  ;;  %v376_v15 = vld [vmem:[%s1329_s1 + $0x38] sm:$0xff] }
   0x5   :  { %413 = vperm.xlu1 %1045, %v371_v4   ;;  %403 = vperm.xlu0 %1044, %v369_v5   ;;  %v1050_v11 = vld [vmem:[%s1330_s2 + $0x20] sm:$0xff]   ;;  %v1051_v14 = vld [vmem:[%s1330_s2 + $0x28] sm:$0xff]   ;;  %v375_v16 = vld [vmem:[%s1329_s1 + $0x30] sm:$0xff] }
   0x6   :  { %v373_v13 = vld [vmem:[%s1329_s1 + $0x20] sm:$0xff]  ;;  %992 = vmatprep.mubr.bf16.mxu0 %v1054_v9  ;;  %1008 = vmatprep.mubr.bf16.mxu1 %v1055_v10  ;;  %v1052_v17 = vld [vmem:[%s1330_s2 + $0x30] sm:$0xff]   ;;  %v378_v18 = vld [vmem:[%s1329_s1 + $0x48] sm:$0xff] }
   0x7   :  { %979 = vmatpush3.bf16.msra.mxu0 %v1047_v1  ;;  %1033 = vmatpush3.bf16.msra.mxu1 %v1047_v1  ;;  %v377_v19 = vld [vmem:[%s1329_s1 + $0x40] sm:$0xff]  ;;  %v1053_v20 = vld [vmem:[%s1330_s2 + $0x38] sm:$0xff]   ;;  %v379_v22 = vld [vmem:[%s1329_s1 + $0x50] sm:$0xff] }
   0x8   :  { %980 = vmatprep.subr.bf16.mxu0 %v1048_v3  ;;  %1026 = vmatprep.subr.bf16.mxu1 %v1048_v3  ;;  %v380_v21 = vld [vmem:[%s1329_s1 + $0x58] sm:$0xff]  ;;  %v1056_v23 = vld [vmem:[%s1328_s0 + $0x8] sm:$0xff]   ;;  %v381_v26 = vld [vmem:[%s1329_s1 + $0x60] sm:$0xff] }
   0x9   :  { %418 = vperm.xlu1 %1045, %v372_v7   ;;  %408 = vperm.xlu0 %1044, %v370_v8   ;;  %v1057_v24 = vld [vmem:[%s1328_s0 + $0x48] sm:$0xff]   ;;  %v1058_v27 = vld [vmem:[%s1328_s0 + $0x10] sm:$0xff]   ;;  %v384_v29 = vld [vmem:[%s1329_s1 + $0x78] sm:$0xff] }
   0xa   :  { %v382_v25 = vld [vmem:[%s1329_s1 + $0x68] sm:$0xff]  ;;  %v1059_v28 = vld [vmem:[%s1328_s0 + $0x50] sm:$0xff]  }
   0xb   :  { %981 = vmatpush3.bf16.msra.mxu0 %v1048_v3  ;;  %1034 = vmatpush3.bf16.msra.mxu1 %v1048_v3  ;;  %v383_v30 = vld [vmem:[%s1329_s1 + $0x70] sm:$0xff] }
   0xc   :  { %982 = vmatprep.subr.bf16.mxu0 %v1049_v6  ;;  %1027 = vmatprep.subr.bf16.mxu1 %v1049_v6 }
   0xd   :  { %428 = vperm.xlu1 %1045, %v374_v12   ;;  %423 = vperm.xlu0 %1044, %v373_v13  }
   0xf   :  { %983 = vmatpush3.bf16.msra.mxu0 %v1049_v6  ;;  %1035 = vmatpush3.bf16.msra.mxu1 %v1049_v6 }
  0x10   :  { %984 = vmatprep.subr.bf16.mxu0 %v1050_v11  ;;  %1028 = vmatprep.subr.bf16.mxu1 %v1050_v11 }
  0x11   :  { %438 = vperm.xlu1 %1045, %v376_v15   ;;  %433 = vperm.xlu0 %1044, %v375_v16  }
  0x13   :  { %985 = vmatpush3.bf16.msra.mxu0 %v1050_v11  ;;  %1036 = vmatpush3.bf16.msra.mxu1 %v1050_v11 }
  0x14   :  { %986 = vmatprep.subr.bf16.mxu0 %v1051_v14  ;;  %1029 = vmatprep.subr.bf16.mxu1 %v1051_v14 }
  0x15   :  { %448 = vperm.xlu1 %1045, %v378_v18   ;;  %443 = vperm.xlu0 %1044, %v377_v19  }
  0x17   :  { %987 = vmatpush3.bf16.msra.mxu0 %v1051_v14  ;;  %1037 = vmatpush3.bf16.msra.mxu1 %v1051_v14 }
  0x18   :  { %988 = vmatprep.subr.bf16.mxu0 %v1052_v17  ;;  %1030 = vmatprep.subr.bf16.mxu1 %v1052_v17 }
  0x19   :  { %458 = vperm.xlu1 %1045, %v380_v21   ;;  %453 = vperm.xlu0 %1044, %v379_v22  }
  0x1b   :  { %989 = vmatpush3.bf16.msra.mxu0 %v1052_v17  ;;  %1038 = vmatpush3.bf16.msra.mxu1 %v1052_v17 }
  0x1c   :  { %990 = vmatprep.subr.bf16.mxu0 %v1053_v20  ;;  %1031 = vmatprep.subr.bf16.mxu1 %v1053_v20 }
  0x1d   :  { %468 = vperm.xlu1 %1045, %v382_v25   ;;  %463 = vperm.xlu0 %1044, %v381_v26  }
  0x1f   :  { %991 = vmatpush3.bf16.msra.mxu0 %v1053_v20  ;;  %1039 = vmatpush3.bf16.msra.mxu1 %v1053_v20 }
  0x22   :  { %993 = vmatmul.mubr.bf16.vlgmr.msra.gmra.mrb[0].mxu0 %v1056_v23  ;;  %1009 = vmatmul.mubr.bf16.vlgmr.msra.gmra.mrb[0].mxu1 %v1057_v24 }
  0x23   :  { %8 = vsyncpa [#allocation3], 0  ;;  %996 = vmatprep.mubr.bf16.mxu0 %v1058_v27  ;;  %1012 = vmatprep.mubr.bf16.mxu1 %v1059_v28  ;;  %v1060_v31 = vld [vmem:[%s1328_s0 + $0x18] sm:$0xff]   ;;  %v386_v33 = vld [vmem:[%s1329_s1 + $0x88] sm:$0xff] }
  0x24   :  { %478 = vperm.xlu1 %1045, %v384_v29   ;;  %473 = vperm.xlu0 %1044, %v383_v30   ;;  %v1061_v32 = vld [vmem:[%s1328_s0 + $0x58] sm:$0xff]   ;;  %v385_v34 = vld [vmem:[%s1329_s1 + $0x80] sm:$0xff]  ;;  %v387_v38 = vld [vmem:[%s1329_s1 + $0x90] sm:$0xff] }
  0x25   :  { %v1062_v35 = vld [vmem:[%s1328_s0 + $0x20] sm:$0xff]   ;;  %v388_v37 = vld [vmem:[%s1329_s1 + $0x98] sm:$0xff]  ;;  %v1064_v39 = vld [vmem:[%s1328_s0 + $0x28] sm:$0xff]  }
  0x26   :  { %v1063_v36 = vld [vmem:[%s1328_s0 + $0x60] sm:$0xff]   ;;  %v1065_v40 = vld [vmem:[%s1328_s0 + $0x68] sm:$0xff]   ;;  %v1066_v43 = vld [vmem:[%s1328_s0 + $0x30] sm:$0xff]  }
  0x27   :  { %v390_v41 = vld [vmem:[%s1329_s1 + $0xa8] sm:$0xff]  ;;  %v389_v42 = vld [vmem:[%s1329_s1 + $0xa0] sm:$0xff]  ;;  %v1067_v44 = vld [vmem:[%s1328_s0 + $0x70] sm:$0xff]  }
  0x28   :  { %488 = vperm.xlu1 %1045, %v386_v33   ;;  %483 = vperm.xlu0 %1044, %v385_v34   ;;  %v392_v45 = vld [vmem:[%s1329_s1 + $0xb8] sm:$0xff]  ;;  %v391_v46 = vld [vmem:[%s1329_s1 + $0xb0] sm:$0xff]  ;;  %v394_v49 = vld [vmem:[%s1329_s1 + $0xc8] sm:$0xff] }
  0x29   :  { %v1068_v47 = vld [vmem:[%s1328_s0 + $0x38] sm:$0xff]   ;;  %v393_v50 = vld [vmem:[%s1329_s1 + $0xc0] sm:$0xff]  ;;  %v395_v52 = vld [vmem:[%s1329_s1 + $0xd0] sm:$0xff] }
  0x2a   :  { %997 = vmatmul.mubr.bf16.gmra.mrb[4].mxu0 %v1060_v31  ;;  %1013 = vmatmul.mubr.bf16.gmra.mrb[4].mxu1 %v1061_v32  ;;  %v1069_v48 = vld [vmem:[%s1328_s0 + $0x78] sm:$0xff]   ;;  %v398_v53 = vld [vmem:[%s1329_s1 + $0xe8] sm:$0xff]  ;;  %v397_v54 = vld [vmem:[%s1329_s1 + $0xe0] sm:$0xff] }
  0x2b   :  { %1000 = vmatprep.mubr.bf16.mxu0 %v1062_v35  ;;  %1016 = vmatprep.mubr.bf16.mxu1 %v1063_v36  ;;  %v396_v51 = vld [vmem:[%s1329_s1 + $0xd8] sm:$0xff]  ;;  %v399_v56 = vld [vmem:[%s1329_s1 + $0xf0] sm:$0xff] }
  0x2c   :  { %498 = vperm.xlu1 %1045, %v388_v37   ;;  %493 = vperm.xlu0 %1044, %v387_v38   ;;  %v400_v55 = vld [vmem:[%s1329_s1 + $0xf8] sm:$0xff]  ;;  %s1095_s1 = smov [#allocation2]  }
  0x2d   :  { %s758_s12 = sshll.u32 %s1095_s1, 4  ;;  %s759_s12 = int_to_ptr.vmem [resolvable:$true] %s758_s12 }
  0x2e   :  { %s1070_s13 = scalar_lea.vmem %s759_s12, 2048  ;;  %p1075_p1 = scmp.lt.s32.totalorder %s759_s12, %s759_s12 }
  0x2f   :  { %p1071_p0 = scmp.ne.s32.totalorder %s759_s12, %s1070_s13  ;;  %p1076_p2 = scmp.lt.s32.totalorder %s1070_s13, %s1070_s13 }
  0x30   :  { %508 = vperm.xlu1 %1045, %v390_v41   ;;  %503 = vperm.xlu0 %1044, %v389_v42  }
  0x31   :  { %p1077_p3 = por %p1076_p2, %p1075_p1 }
  0x32   :  { %1001 = vmatmul.mubr.bf16.gmra.mrb[8].mxu0 %v1064_v39  ;;  %1017 = vmatmul.mubr.bf16.gmra.mrb[8].mxu1 %v1065_v40 }
  0x33   :  { %1004 = vmatprep.mubr.bf16.mxu0 %v1066_v43  ;;  %1020 = vmatprep.mubr.bf16.mxu1 %v1067_v44  ;;  %p1078_p4 = pnand %p1077_p3, %p1071_p0 }
  0x34   :  { %518 = vperm.xlu1 %1045, %v392_v45   ;;  %513 = vperm.xlu0 %1044, %v391_v46  }
  0x38   :  { %528 = vperm.xlu1 %1045, %v394_v49   ;;  %523 = vperm.xlu0 %1044, %v393_v50  }
  0x3a   :  { %1005 = vmatmul.mubr.bf16.gmra.mrb[12].mxu0 %v1068_v47  ;;  %1021 = vmatmul.mubr.bf16.gmra.mrb[12].mxu1 %v1069_v48 }
  0x3c   :  { %538 = vperm.xlu1 %1045, %v396_v51   ;;  %533 = vperm.xlu0 %1044, %v395_v52  }
  0x40   :  { %548 = vperm.xlu1 %1045, %v398_v53   ;;  %543 = vperm.xlu0 %1044, %v397_v54  }
  0x44   :  { %558 = vperm.xlu1 %1045, %v400_v55   ;;  %553 = vperm.xlu0 %1044, %v399_v56  }
  0x84   :  { %v414_v57 = vpop.permute.xlu1 %413  ;;  %v404_v58 = vpop.permute.xlu0 %403 }
  0x88   :  { %v419_v59 = vpop.permute.xlu1 %418  ;;  %v409_v60 = vpop.permute.xlu0 %408 }
  0x8c   :  { %v429_v61 = vpop.permute.xlu1 %428  ;;  %v424_v62 = vpop.permute.xlu0 %423 }
  0x90   :  { %v439_v63 = vpop.permute.xlu1 %438  ;;  %v434_v0 = vpop.permute.xlu0 %433 }
  0x94   :  { %v1286_v1 = vpop.permute.xlu1 %448  ;;  %v1288_v2 = vpop.permute.xlu0 %443 }
  0x98   :  { %v1290_v3 = vpop.permute.xlu1 %458  ;;  %v1292_v4 = vpop.permute.xlu0 %453 }
  0x9c   :  { %v1294_v5 = vpop.permute.xlu1 %468  ;;  %v1296_v6 = vpop.permute.xlu0 %463 }
  0xa3   :  { %v1298_v7 = vpop.permute.xlu1 %478  ;;  %v1300_v8 = vpop.permute.xlu0 %473 }
  0xa7   :  { %v489_v9 = vpop.permute.xlu1 %488  ;;  %v484_v10 = vpop.permute.xlu0 %483 }
  0xab   :  { %v499_v11 = vpop.permute.xlu1 %498  ;;  %v494_v12 = vpop.permute.xlu0 %493 }
  0xaf   :  { %v509_v13 = vpop.permute.xlu1 %508  ;;  %v504_v14 = vpop.permute.xlu0 %503 }
  0xb3   :  { %v519_v15 = vpop.permute.xlu1 %518  ;;  %v514_v16 = vpop.permute.xlu0 %513 }
  0xb7   :  { %v1302_v17 = vpop.permute.xlu1 %528  ;;  %v1304_v18 = vpop.permute.xlu0 %523 }
  0xbb   :  { %v539_v39 = vpop.permute.xlu1 %538  ;;  %v534_v40 = vpop.permute.xlu0 %533 }
  0xf5   :  { %v994_v19 = vpop.f32.mrb[0].mxu0  ;;  %v1010_v20 = vpop.f32.mrb[0].mxu1 }
  0xf6   :  { %v242_v21 = vpop.f32.mrb[1].mxu0  ;;  %v306_v22 = vpop.f32.mrb[1].mxu1  ;;  %v563_v25 = vmul.f32 %v994_v19, %v414_v57  ;;  %v579_v26 = vmul.f32 %v1010_v20, %v494_v12 }
  0xf7   :  { %v995_v23 = vpop.f32.mrb[2].mxu0  ;;  %v1011_v24 = vpop.f32.mrb[2].mxu1  ;;  %v561_v31 = vmul.f32 %v404_v58, %v242_v21  ;;  %v577_v32 = vmul.f32 %v484_v10, %v306_v22 }
  0xf8   :  { %v564_v27 = vmul.f32 %v995_v23, %v419_v59  ;;  %v580_v28 = vmul.f32 %v1011_v24, %v499_v11  ;;  %v245_v29 = vpop.f32.mrb[3].mxu0  ;;  %v309_v30 = vpop.f32.mrb[3].mxu1 }
  0xf9   :  { %v562_v33 = vmul.f32 %v409_v60, %v245_v29  ;;  %v578_v34 = vmul.f32 %v489_v9, %v309_v30  ;;  %v549_v9 = vpop.permute.xlu1 %548  ;;  %v544_v10 = vpop.permute.xlu0 %543 }
  0xfa   :  { %v865_v35 = vpack.c.bf16 %v564_v27, %v563_v25  ;;  %v905_v36 = vpack.c.bf16 %v580_v28, %v579_v26 }
  0xfb   :  { %v860_v37 = vpack.c.bf16 %v562_v33, %v561_v31  ;;  %v900_v38 = vpack.c.bf16 %v578_v34, %v577_v32 }
  0xfc   :  { %937 = vst [vmem:[#allocation2 + $0x8] sm:$0xff] %v865_v35   ;;  %945 = vst [vmem:[#allocation2 + $0x48] sm:$0xff] %v905_v36  }
  0xfd   :  { %861 = vst [vmem:[#allocation2] sm:$0xff] %v860_v37   ;;  %944 = vst [vmem:[#allocation2 + $0x40] sm:$0xff] %v900_v38   ;;  %v998_v41 = vpop.f32.mrb[4].mxu0  ;;  %v1014_v42 = vpop.f32.mrb[4].mxu1 }
  0xfe   :  { %v258_v43 = vpop.f32.mrb[5].mxu0  ;;  %v322_v44 = vpop.f32.mrb[5].mxu1  ;;  %v567_v47 = vmul.f32 %v998_v41, %v434_v0  ;;  %v583_v48 = vmul.f32 %v1014_v42, %v514_v16 }
  0xff   :  { %v999_v45 = vpop.f32.mrb[6].mxu0  ;;  %v1015_v46 = vpop.f32.mrb[6].mxu1  ;;  %v565_v53 = vmul.f32 %v424_v62, %v258_v43  ;;  %v581_v54 = vmul.f32 %v504_v14, %v322_v44 }
 0x100   :  { %v568_v49 = vmul.f32 %v999_v45, %v439_v63  ;;  %v584_v50 = vmul.f32 %v1015_v46, %v519_v15  ;;  %v261_v51 = vpop.f32.mrb[7].mxu0  ;;  %v325_v52 = vpop.f32.mrb[7].mxu1 }
 0x101   :  { %v566_v55 = vmul.f32 %v429_v61, %v261_v51  ;;  %v582_v56 = vmul.f32 %v509_v13, %v325_v52  ;;  %v559_v29 = vpop.permute.xlu1 %558 }
 0x102   :  { %v875_v57 = vpack.c.bf16 %v568_v49, %v567_v47  ;;  %v915_v58 = vpack.c.bf16 %v584_v50, %v583_v48 }
 0x103   :  { %v870_v59 = vpack.c.bf16 %v566_v55, %v565_v53  ;;  %v910_v60 = vpack.c.bf16 %v582_v56, %v581_v54 }
 0x104   :  { %939 = vst [vmem:[#allocation2 + $0x18] sm:$0xff] %v875_v57   ;;  %947 = vst [vmem:[#allocation2 + $0x58] sm:$0xff] %v915_v58  }
 0x105   :  { %938 = vst [vmem:[#allocation2 + $0x10] sm:$0xff] %v870_v59   ;;  %946 = vst [vmem:[#allocation2 + $0x50] sm:$0xff] %v910_v60   ;;  %v1002_v0 = vpop.f32.mrb[8].mxu0  ;;  %v1018_v11 = vpop.f32.mrb[8].mxu1 }
 0x106   :  { %v274_v63 = vpop.f32.mrb[9].mxu0  ;;  %v338_v12 = vpop.f32.mrb[9].mxu1  ;;  %v571_v62 = vmul.f32 %v1002_v0, %v1292_v4  ;;  %v587_v61 = vmul.f32 %v1018_v11, %v534_v40 }
 0x107   :  { %v1003_v15 = vpop.f32.mrb[10].mxu0  ;;  %v1019_v16 = vpop.f32.mrb[10].mxu1  ;;  %v569_v21 = vmul.f32 %v1288_v2, %v274_v63  ;;  %v585_v22 = vmul.f32 %v1304_v18, %v338_v12 }
 0x108   :  { %v572_v13 = vmul.f32 %v1003_v15, %v1290_v3  ;;  %v588_v14 = vmul.f32 %v1019_v16, %v539_v39  ;;  %v277_v19 = vpop.f32.mrb[11].mxu0  ;;  %v341_v20 = vpop.f32.mrb[11].mxu1 }
 0x109   :  { %v570_v23 = vmul.f32 %v1286_v1, %v277_v19  ;;  %v586_v24 = vmul.f32 %v1302_v17, %v341_v20  ;;  %v554_v4 = vpop.permute.xlu0 %553 }
 0x10a   :  { %v885_v25 = vpack.c.bf16 %v572_v13, %v571_v62  ;;  %v925_v26 = vpack.c.bf16 %v588_v14, %v587_v61 }
 0x10b   :  { %v880_v27 = vpack.c.bf16 %v570_v23, %v569_v21  ;;  %v920_v28 = vpack.c.bf16 %v586_v24, %v585_v22 }
 0x10c   :  { %941 = vst [vmem:[#allocation2 + $0x28] sm:$0xff] %v885_v25   ;;  %949 = vst [vmem:[#allocation2 + $0x68] sm:$0xff] %v925_v26  }
 0x10d   :  { %940 = vst [vmem:[#allocation2 + $0x20] sm:$0xff] %v880_v27   ;;  %948 = vst [vmem:[#allocation2 + $0x60] sm:$0xff] %v920_v28   ;;  %v1006_v3 = vpop.f32.mrb[12].mxu0  ;;  %v1022_v30 = vpop.f32.mrb[12].mxu1 }
 0x10e   :  { %v290_v31 = vpop.f32.mrb[13].mxu0  ;;  %v354_v2 = vpop.f32.mrb[13].mxu1  ;;  %v575_v1 = vmul.f32 %v1006_v3, %v1300_v8  ;;  %v591_v17 = vmul.f32 %v1022_v30, %v554_v4 }
 0x10f   :  { %v1007_v32 = vpop.f32.mrb[14].mxu0  ;;  %v1023_v18 = vpop.f32.mrb[14].mxu1  ;;  %v573_v37 = vmul.f32 %v1296_v6, %v290_v31  ;;  %v589_v38 = vmul.f32 %v544_v10, %v354_v2 }
 0x110   :  { %v576_v33 = vmul.f32 %v1007_v32, %v1298_v7  ;;  %v592_v34 = vmul.f32 %v1023_v18, %v559_v29  ;;  %v293_v35 = vpop.f32.mrb[15].mxu0  ;;  %v357_v36 = vpop.f32.mrb[15].mxu1 }
 0x111   :  { %v574_v39 = vmul.f32 %v1294_v5, %v293_v35  ;;  %v590_v40 = vmul.f32 %v549_v9, %v357_v36 }
 0x112   :  { %v895_v41 = vpack.c.bf16 %v576_v33, %v575_v1  ;;  %v935_v42 = vpack.c.bf16 %v592_v34, %v591_v17 }
 0x113   :  { %v890_v43 = vpack.c.bf16 %v574_v39, %v573_v37  ;;  %v930_v44 = vpack.c.bf16 %v590_v40, %v589_v38 }
 0x114   :  { %943 = vst [vmem:[#allocation2 + $0x38] sm:$0xff] %v895_v41   ;;  %951 = vst [vmem:[#allocation2 + $0x78] sm:$0xff] %v935_v42  }
 0x115   :  { %942 = vst [vmem:[#allocation2 + $0x30] sm:$0xff] %v890_v43   ;;  %950 = vst [vmem:[#allocation2 + $0x70] sm:$0xff] %v930_v44  }
 0x116   :  { %1081 = shalt.err (!%p1078_p4)
}
 0x117   :  { %s1082_s16 = scalar_lea.hbm %s1331_s3, 2048 }
 0x118   :  { %p1083_p5 = scmp.ne.s32.totalorder %s1331_s3, %s1082_s16  ;;  %p1086_p6 = scmp.lt.u32.totalorder %s1082_s16, %s1331_s3 }
 0x11a   :  { %p1088_p7 = pnand %p1086_p6, %p1083_p5 }
 0x11c   :  { %1091 = shalt.err (!%p1088_p7)
}
 0x11d   :  { %s1096_s21 = smov 64   ;;  %s1097_s22 = smov 4  }
 0x11e   :  { %764 = dma.vmem_to_hbm [thread:$0]  %s759_s12, 2048, %s1331_s3, [#allocation3], %s1096_s21, %s1096_s21, %s1097_s22  }
 0x11f   :  { %1092 = dma.done.wait [#allocation3], 2048  }
 0x120   :  { %1093 = vsyncadd [#allocation3], 4294965248 }
 0x121   :  { %768 = vsyncpa [#allocation3], 1 }

</bundles_post_ra>
